<compile_context>
chip_gen: v6e
topology: v6e:2x2x1
jax: 0.10.0
libtpu: 0.0.40
codegen_flags: <defaults>
</compile_context>

<pallas_src>
import functools

import jax
import jax.numpy as jnp
from jax.experimental import pallas as pl
from jax.experimental.pallas import tpu as pltpu


def _triplet_kernel(a_ref, p_ref, n_ref, out_ref, *, margin, dist_type, batch, tile_rows):
    a = a_ref[...].astype(jnp.float32)
    p = p_ref[...].astype(jnp.float32)
    n = n_ref[...].astype(jnp.float32)

    if dist_type == "cos":
        # torch.cosine_similarity(x, y, dim=1, eps=1e-8):
        #   dot(x, y) / sqrt(max(||x||^2 * ||y||^2, eps^2))
        # rsqrt on the clamped squared-norm product -> EUP slot, no divides.
        eps = 1e-8
        dot_an = jnp.sum(a * n, axis=-1, keepdims=True)
        dot_ap = jnp.sum(a * p, axis=-1, keepdims=True)
        ssq_a = jnp.sum(a * a, axis=-1, keepdims=True)
        ssq_p = jnp.sum(p * p, axis=-1, keepdims=True)
        ssq_n = jnp.sum(n * n, axis=-1, keepdims=True)
        cos_an = dot_an * jax.lax.rsqrt(jnp.maximum(ssq_a * ssq_n, eps * eps))
        cos_ap = dot_ap * jax.lax.rsqrt(jnp.maximum(ssq_a * ssq_p, eps * eps))
        per_row = jnp.maximum(cos_an - cos_ap + margin, 0.0)
    else:
        # torch.pairwise_distance(x, y, p=2, eps=1e-6): ||x - y + eps||_2
        eps = 1e-6
        dap = a - p + eps
        dan = a - n + eps
        dist_ap = jnp.sqrt(jnp.sum(dap * dap, axis=-1, keepdims=True))
        dist_an = jnp.sqrt(jnp.sum(dan * dan, axis=-1, keepdims=True))
        per_row = jnp.maximum(dist_ap - dist_an + margin, 0.0)

    # Mask rows of the ragged last tile so the wrapper can divide by the true B.
    # (select, not multiply -> immune to garbage in padded rows)
    row0 = pl.program_id(0) * tile_rows
    row_ids = row0 + jax.lax.broadcasted_iota(jnp.int32, per_row.shape, 0)
    per_row = jnp.where(row_ids < batch, per_row, 0.0)

    # Per-tile partial sum written to this step's own lane-dense output block
    # (keeps the grid axis "parallel" -> both v7x TensorCores can stream).
    partial = jnp.sum(per_row)
    out_ref[...] = jnp.full(out_ref.shape, partial, dtype=jnp.float32)


def _pick_tile_rows(B, D, itemsize):
    """Rows per tile: 3 inputs x 2 pipeline buffers kept under ~36 MiB (v7x-safe)."""
    budget = 36 * 1024 * 1024
    per_row_bytes = 3 * 2 * D * itemsize
    # Sublane-aligned row tiles: 8 rows for f32, 16 for bf16, 32 for int8/fp8.
    align = 8 * max(1, 4 // itemsize)
    if B <= align:
        return B                       # single full-height block
    tb = budget // per_row_bytes
    tb = max(align, min(tb, 2048, B))  # cap to bound live temporaries / compile time
    return (tb // align) * align


def triplet_loss(a, p, n, *, margin=0.1, dist_type="cos"):
    """Pallas TPU implementation of TripletLoss.forward. a, p, n: (B, D)."""
    B, D = a.shape
    itemsize = jnp.dtype(a.dtype).itemsize
    tb = _pick_tile_rows(B, D, itemsize)
    num_tiles = pl.cdiv(B, tb)

    kernel = functools.partial(
        _triplet_kernel, margin=margin, dist_type=dist_type, batch=B, tile_rows=tb
    )

    out = pl.pallas_call(
        kernel,
        out_shape=jax.ShapeDtypeStruct((num_tiles * 8, 128), jnp.float32),
        grid=(num_tiles,),
        in_specs=[
            pl.BlockSpec((tb, D), lambda i: (i, 0)),
            pl.BlockSpec((tb, D), lambda i: (i, 0)),
            pl.BlockSpec((tb, D), lambda i: (i, 0)),
        ],
        out_specs=pl.BlockSpec((8, 128), lambda i: (i, 0)),
        compiler_params=pltpu.CompilerParams(
            dimension_semantics=("parallel",),
            # Above the 16/32 MiB scoped defaults, below every chip's physical VMEM.
            vmem_limit_bytes=48 * 1024 * 1024,
        ),
    )(a, p, n)

    # Tiny final reduction in plain JAX: one partial sum per tile, divide by true B.
    partials = out.reshape(num_tiles, 8, 128)[:, 0, 0]
    return jnp.sum(partials) / B


def _triplet_loss_ref(a, p, n, margin=0.1, dist_type="cos"):
    a = a.astype(jnp.float32)
    p = p.astype(jnp.float32)
    n = n.astype(jnp.float32)
    if dist_type == "cos":
        eps = 1e-8

        def cos(x, y):
            dot = jnp.sum(x * y, axis=-1)
            ssq = jnp.sum(x * x, axis=-1) * jnp.sum(y * y, axis=-1)
            return dot / jnp.sqrt(jnp.maximum(ssq, eps * eps))

        return jnp.mean(jax.nn.relu(cos(a, n) - cos(a, p) + margin))
    eps = 1e-6
    d_ap = jnp.linalg.norm(a - p + eps, axis=-1)
    d_an = jnp.linalg.norm(a - n + eps, axis=-1)
    return jnp.mean(jax.nn.relu(d_ap - d_an + margin))


if __name__ == "__main__":
    key = jax.random.PRNGKey(0)
    ka, kp, kn = jax.random.split(key, 3)
    B, D = 8, 128
    a = jax.random.normal(ka, (B, D), dtype=jnp.float32)
    p = jax.random.normal(kp, (B, D), dtype=jnp.float32)
    n = jax.random.normal(kn, (B, D), dtype=jnp.float32)

    # cosine branch (module default)
    loss_cos = jax.block_until_ready(triplet_loss(a, p, n, margin=0.1, dist_type="cos"))
    ref_cos = _triplet_loss_ref(a, p, n, 0.1, "cos")
    assert jnp.allclose(loss_cos, ref_cos, atol=1e-5, rtol=1e-5), (loss_cos, ref_cos)

    # euclidean branch
    loss_euc = jax.block_until_ready(triplet_loss(a, p, n, margin=0.1, dist_type="euclid"))
    ref_euc = _triplet_loss_ref(a, p, n, 0.1, "euclid")
    assert jnp.allclose(loss_euc, ref_euc, atol=1e-5, rtol=1e-5), (loss_euc, ref_euc)

    # ragged batch (B not a multiple of the row tile) -> exercises the tile mask
    B2 = 13
    a2 = jax.random.normal(ka, (B2, D), dtype=jnp.float32)
    p2 = jax.random.normal(kp, (B2, D), dtype=jnp.float32)
    n2 = jax.random.normal(kn, (B2, D), dtype=jnp.float32)
    loss_r = jax.block_until_ready(triplet_loss(a2, p2, n2, margin=0.1, dist_type="cos"))
    ref_r = _triplet_loss_ref(a2, p2, n2, 0.1, "cos")
    assert jnp.allclose(loss_r, ref_r, atol=1e-5, rtol=1e-5), (loss_r, ref_r)

    # bf16 inputs (halved HBM traffic), f32 accumulation inside the kernel
    a_bf = a2.astype(jnp.bfloat16)
    p_bf = p2.astype(jnp.bfloat16)
    n_bf = n2.astype(jnp.bfloat16)
    loss_bf = jax.block_until_ready(triplet_loss(a_bf, p_bf, n_bf, margin=0.1, dist_type="euclid"))
    ref_bf = _triplet_loss_ref(a_bf, p_bf, n_bf, 0.1, "euclid")
    assert jnp.allclose(loss_bf, ref_bf, atol=1e-3, rtol=1e-3), (loss_bf, ref_bf)

    print("KERNEL_OK")
</pallas_src>

<mosaic_0001>
module attributes {stable_mosaic.version = 11 : i64} {
  func.func @_triplet_kernel(%arg0: i32, %arg1: memref<8x128xf32, #tpu.memory_space<vmem>>, %arg2: memref<8x128xf32, #tpu.memory_space<vmem>>, %arg3: memref<8x128xf32, #tpu.memory_space<vmem>>, %arg4: memref<8x128xf32, #tpu.memory_space<vmem>>) attributes {dimension_semantics = [#tpu.dimension_semantics<parallel>], iteration_bounds = array<i64: 1>, scalar_prefetch = 0 : i64, scratch_operands = 0 : i64, tpu.core_type = #tpu.core_type<tc>, window_params = [{transform_indices = @transform_0, window_bounds = array<i64: 8, 128>}, {transform_indices = @transform_1, window_bounds = array<i64: 8, 128>}, {transform_indices = @transform_2, window_bounds = array<i64: 8, 128>}, {transform_indices = @transform_3, window_bounds = array<i64: 8, 128>}]} {
    %c0 = arith.constant 0 : index
    %c0_0 = arith.constant 0 : index
    %0 = vector.load %arg1[%c0, %c0_0] : memref<8x128xf32, #tpu.memory_space<vmem>>, vector<8x128xf32>
    %c0_1 = arith.constant 0 : index
    %c0_2 = arith.constant 0 : index
    %1 = vector.load %arg2[%c0_1, %c0_2] : memref<8x128xf32, #tpu.memory_space<vmem>>, vector<8x128xf32>
    %c0_3 = arith.constant 0 : index
    %c0_4 = arith.constant 0 : index
    %2 = vector.load %arg3[%c0_3, %c0_4] : memref<8x128xf32, #tpu.memory_space<vmem>>, vector<8x128xf32>
    %3 = arith.mulf %0, %2 : vector<8x128xf32>
    %cst = arith.constant dense<0.000000e+00> : vector<8xf32>
    %4 = vector.multi_reduction <add>, %3, %cst [1] : vector<8x128xf32> to vector<8xf32>
    %5 = vector.shape_cast %4 : vector<8xf32> to vector<8x1xf32>
    %6 = arith.mulf %0, %1 : vector<8x128xf32>
    %cst_5 = arith.constant dense<0.000000e+00> : vector<8xf32>
    %7 = vector.multi_reduction <add>, %6, %cst_5 [1] : vector<8x128xf32> to vector<8xf32>
    %8 = vector.shape_cast %7 : vector<8xf32> to vector<8x1xf32>
    %9 = arith.mulf %0, %0 : vector<8x128xf32>
    %cst_6 = arith.constant dense<0.000000e+00> : vector<8xf32>
    %10 = vector.multi_reduction <add>, %9, %cst_6 [1] : vector<8x128xf32> to vector<8xf32>
    %11 = vector.shape_cast %10 : vector<8xf32> to vector<8x1xf32>
    %12 = arith.mulf %1, %1 : vector<8x128xf32>
    %cst_7 = arith.constant dense<0.000000e+00> : vector<8xf32>
    %13 = vector.multi_reduction <add>, %12, %cst_7 [1] : vector<8x128xf32> to vector<8xf32>
    %14 = vector.shape_cast %13 : vector<8xf32> to vector<8x1xf32>
    %15 = arith.mulf %2, %2 : vector<8x128xf32>
    %cst_8 = arith.constant dense<0.000000e+00> : vector<8xf32>
    %16 = vector.multi_reduction <add>, %15, %cst_8 [1] : vector<8x128xf32> to vector<8xf32>
    %17 = vector.shape_cast %16 : vector<8xf32> to vector<8x1xf32>
    %18 = arith.mulf %11, %17 : vector<8x1xf32>
    %cst_9 = arith.constant 1.000000e-16 : f32
    %19 = vector.broadcast %cst_9 : f32 to vector<8x1xf32>
    %20 = arith.maximumf %18, %19 : vector<8x1xf32>
    %21 = math.rsqrt %20 : vector<8x1xf32>
    %22 = arith.mulf %5, %21 : vector<8x1xf32>
    %23 = arith.mulf %11, %14 : vector<8x1xf32>
    %cst_10 = arith.constant 1.000000e-16 : f32
    %24 = vector.broadcast %cst_10 : f32 to vector<8x1xf32>
    %25 = arith.maximumf %23, %24 : vector<8x1xf32>
    %26 = math.rsqrt %25 : vector<8x1xf32>
    %27 = arith.mulf %8, %26 : vector<8x1xf32>
    %28 = arith.subf %22, %27 : vector<8x1xf32>
    %cst_11 = arith.constant 1.000000e-01 : f32
    %29 = vector.broadcast %cst_11 : f32 to vector<8x1xf32>
    %30 = arith.addf %28, %29 : vector<8x1xf32>
    %cst_12 = arith.constant 0.000000e+00 : f32
    %31 = vector.broadcast %cst_12 : f32 to vector<8x1xf32>
    %32 = arith.maximumf %30, %31 : vector<8x1xf32>
    %c8_i32 = arith.constant 8 : i32
    %33 = arith.muli %arg0, %c8_i32 : i32
    %34 = tpu.iota {dimensions = array<i32: 0>} : vector<8x1xi32>
    %35 = vector.broadcast %33 : i32 to vector<8x1xi32>
    %36 = arith.addi %35, %34 : vector<8x1xi32>
    %c8_i32_13 = arith.constant 8 : i32
    %37 = vector.broadcast %c8_i32_13 : i32 to vector<8x1xi32>
    %38 = arith.cmpi slt, %36, %37 : vector<8x1xi32>
    %cst_14 = arith.constant 0.000000e+00 : f32
    %39 = vector.broadcast %cst_14 : f32 to vector<8x1xf32>
    %40 = arith.select %38, %32, %39 : vector<8x1xi1>, vector<8x1xf32>
    %41 = vector.shape_cast %40 : vector<8x1xf32> to vector<1x8x1xf32>
    %cst_15 = arith.constant dense<0.000000e+00> : vector<1xf32>
    %42 = vector.multi_reduction <add>, %41, %cst_15 [1, 2] : vector<1x8x1xf32> to vector<1xf32>
    %43 = vector.shape_cast %42 : vector<1xf32> to vector<1x1x1xf32>
    %44 = vector.extract %43[0, 0, 0] : f32 from vector<1x1x1xf32>
    %45 = vector.broadcast %44 : f32 to vector<8x128xf32>
    %c0_16 = arith.constant 0 : index
    %c0_17 = arith.constant 0 : index
    %46 = vector.load %arg4[%c0_16, %c0_17] : memref<8x128xf32, #tpu.memory_space<vmem>>, vector<8x128xf32>
    tpu.vector_store %arg4[%c0_16, %c0_17], %45 {strides = array<i32>} : memref<8x128xf32, #tpu.memory_space<vmem>>, vector<8x128xf32>,
    return
  }
  func.func @transform_0(%arg0: i32) -> (i32, i32) {
    %c0_i32 = arith.constant 0 : i32
    %c0_i32_0 = arith.constant 0 : i32
    return %arg0, %c0_i32 : i32, i32
  }
  func.func @transform_1(%arg0: i32) -> (i32, i32) {
    %c0_i32 = arith.constant 0 : i32
    %c0_i32_0 = arith.constant 0 : i32
    return %arg0, %c0_i32 : i32, i32
  }
  func.func @transform_2(%arg0: i32) -> (i32, i32) {
    %c0_i32 = arith.constant 0 : i32
    %c0_i32_0 = arith.constant 0 : i32
    return %arg0, %c0_i32 : i32, i32
  }
  func.func @transform_3(%arg0: i32) -> (i32, i32) {
    %c0_i32 = arith.constant 0 : i32
    %c0_i32_0 = arith.constant 0 : i32
    return %arg0, %c0_i32 : i32, i32
  }
}

</mosaic_0001>

<bundles_post_ra>
// kernel: tpu_custom_call.1
= control target key start
LH: loop header
LB: loop body
LE: loop exit
PB: predicated region body
PF: predicated region fallthrough
CT: control target
= control target key end

     0   :  { %8 = vsyncpa [#allocation3], 0  ;;  %s247_s0 = inlined_call_operand.hbm [shape: f32[8,128], index: 0, kind: input, shape index: {}]   ;;  %s248_s1 = inlined_call_operand.hbm [shape: f32[8,128], index: 1, kind: input, shape index: {}]   ;;  %s249_s2 = inlined_call_operand.hbm [shape: f32[8,128], index: 2, kind: input, shape index: {}]   ;;  %s250_s3 = inlined_call_operand.hbm [shape: f32[8,128], index: 3, kind: output, shape index: {}]  }
   0x1   :  { %9 = vsyncpa [#allocation6], 0 }
   0x2   :  { %10 = vsyncpa [#allocation4], 0  ;;  %s211_s12 = smov [#allocation5]   ;;  %s212_s14 = smov [#allocation2]  }
   0x3   :  { %s27_s13 = sshll.u32 %s211_s12, 4  ;;  %s17_s15 = sshll.u32 %s212_s14, 4  ;;  %s28_s13 = int_to_ptr.vmem [resolvable:$true] %s27_s13  ;;  %s18_s15 = int_to_ptr.vmem [resolvable:$true] %s17_s15 }
   0x4   :  { %s133_s16 = scalar_lea.vmem %s28_s13, 128  ;;  %p138_p1 = scmp.lt.s32.totalorder %s28_s13, %s28_s13 }
   0x5   :  { %p134_p0 = scmp.ne.s32.totalorder %s28_s13, %s133_s16  ;;  %p139_p2 = scmp.lt.s32.totalorder %s133_s16, %s133_s16 }
   0x7   :  { %p140_p3 = por %p139_p2, %p138_p1 }
   0x9   :  { %p141_p4 = pnand %p140_p3, %p134_p0 }
   0xb   :  { %144 = shalt.err (!%p141_p4)
}
   0xc   :  { %30 = dma.hbm_to_vmem [thread:$0]  %s248_s1, 128, %s28_s13, [#allocation6]  }
   0xd   :  { %s153_s19 = scalar_lea.vmem %s18_s15, 128  ;;  %p158_p6 = scmp.lt.s32.totalorder %s18_s15, %s18_s15 }
   0xe   :  { %p154_p5 = scmp.ne.s32.totalorder %s18_s15, %s153_s19  ;;  %p159_p7 = scmp.lt.s32.totalorder %s153_s19, %s153_s19 }
  0x10   :  { %p160_p8 = por %p159_p7, %p158_p6 }
  0x12   :  { %p161_p9 = pnand %p160_p8, %p154_p5 }
  0x14   :  { %164 = shalt.err (!%p161_p9)
}
  0x15   :  { %20 = dma.hbm_to_vmem [thread:$0]  %s247_s0, 128, %s18_s15, [#allocation3]  }
  0x16   :  { %s213_s22 = smov [#allocation7]  }
  0x17   :  { %s37_s23 = sshll.u32 %s213_s22, 4  ;;  %s38_s23 = int_to_ptr.vmem [resolvable:$true] %s37_s23 }
  0x18   :  { %s173_s24 = scalar_lea.vmem %s38_s23, 128  ;;  %p178_p11 = scmp.lt.s32.totalorder %s38_s23, %s38_s23 }
  0x19   :  { %p174_p10 = scmp.ne.s32.totalorder %s38_s23, %s173_s24  ;;  %p179_p12 = scmp.lt.s32.totalorder %s173_s24, %s173_s24 }
  0x1b   :  { %p180_p13 = por %p179_p12, %p178_p11 }
  0x1d   :  { %p181_p0 = pnand %p180_p13, %p174_p10 }
  0x1f   :  { %184 = shalt.err (!%p181_p0)
}
  0x20   :  { %40 = dma.hbm_to_vmem [thread:$0]  %s249_s2, 128, %s38_s23, [#allocation6]  }
  0x21   :  { %205 = dma.done.wait [#allocation3], 128  }
  0x22   :  { %206 = vsyncadd [#allocation3], 4294967168 }
  0x23   :  { %207 = dma.done.wait [#allocation6], 256  }
  0x24   :  { %208 = vsyncadd [#allocation6], 4294967040  ;;  %v52_v0 = vld [vmem:[#allocation7] sm:$0xff]  ;;  %v50_v1 = vld [vmem:[#allocation2] sm:$0xff]  ;;  %vm86_vm0 = vcmask 7168   ;;  %s214_s0 = smov [#allocation8]  }
  0x25   :  { %v51_v2 = vld [vmem:[#allocation5] sm:$0xff]  ;;  %v65_v3 = vmul.f32 %v52_v0, %v52_v0  ;;  %v59_v4 = vmul.f32 %v50_v1, %v50_v1  ;;  %v53_v6 = vmul.f32 %v52_v0, %v50_v1  ;;  %s105_s2 = sshll.u32 %s214_s0, 4  ;;  %s106_s2 = int_to_ptr.vmem [resolvable:$true] %s105_s2 }
  0x26   :  { %v62_v5 = vmul.f32 %v51_v2, %v51_v2  ;;  %v56_v7 = vmul.f32 %v51_v2, %v50_v1  ;;  %s185_s27 = scalar_lea.vmem %s106_s2, 128  ;;  %p190_p2 = scmp.lt.s32.totalorder %s106_s2, %s106_s2 }
  0x27   :  { %66 = vadd.xlane.f32.xlu1 %v65_v3  ;;  %60 = vadd.xlane.f32.xlu0 %v59_v4  ;;  %p186_p1 = scmp.ne.s32.totalorder %s106_s2, %s185_s27  ;;  %p191_p3 = scmp.lt.s32.totalorder %s185_s27, %s185_s27 }
  0x29   :  { %p192_p4 = por %p191_p3, %p190_p2 }
  0x2b   :  { %63 = vadd.xlane.f32.xlu0 %v62_v5  ;;  %54 = vadd.xlane.f32.xlu1 %v53_v6  ;;  %p193_p5 = pnand %p192_p4, %p186_p1 }
  0x2f   :  { %57 = vadd.xlane.f32.xlu0 %v56_v7 }
  0xb0   :  { %v67_v8 = vpop.xlane.xlu1 %66  ;;  %v61_v9 = vpop.xlane.xlu0 %60 }
  0xb1   :  { %v68_v10 = vmul.f32 %v67_v8, %v61_v9 }
  0xb3   :  { %v69_v11 = vmax.f32 %v68_v10, 1e-16 }
  0xb4   :  { %v64_v12 = vpop.xlane.xlu0 %63  ;;  %v55_v16 = vpop.xlane.xlu1 %54 }
  0xb5   :  { %v72_v13 = vmul.f32 %v64_v12, %v61_v9  ;;  %121 = vrsqrt.f32 %v69_v11 }
  0xb7   :  { %v73_v14 = vmax.f32 %v72_v13, 1e-16 }
  0xb8   :  { %v58_v17 = vpop.xlane.xlu0 %57 }
  0xb9   :  { %123 = vrsqrt.f32 %v73_v14 }
  0xc2   :  { %v122_v15 = vpop.eup %121 }
  0xc3   :  { %v71_v19 = vmul.f32 %v122_v15, %v55_v16 }
  0xc6   :  { %v124_v18 = vpop.eup %123 }
  0xc7   :  { %v75_v20 = vmul.f32 %v124_v18, %v58_v17 }
  0xc9   :  { %v76_v21 = vsub.f32 %v71_v19, %v75_v20 }
  0xcb   :  { %v77_v22 = vadd.f32 0.1, %v76_v21 }
  0xcd   :  { %v78_v23 = vmax.f32 %v77_v22, 0.0 }
  0xcf   :  { %v87_v24 = vsel %vm86_vm0, %v78_v23, 0.0 }
  0xd0   :  { %88 = vadd.xlane.f32.xlu1 %v87_v24 }
 0x159   :  { %v89_v25 = vpop.xlane.xlu1 %88 }
 0x15a   :  { %v90_v26 = vrot.slane %v89_v25, 4 }
 0x15c   :  { %v91_v27 = vadd.f32 %v90_v26, %v89_v25 }
 0x15e   :  { %v92_v28 = vrot.slane %v91_v27, 2 }
 0x160   :  { %v93_v29 = vadd.f32 %v92_v28, %v91_v27 }
 0x162   :  { %v94_v30 = vrot.slane %v93_v29, 1 }
 0x164   :  { %v95_v31 = vadd.f32 %v94_v30, %v93_v29 }
 0x166   :  { %115 = vpush %v95_v31 }
 0x197   :  { %s116_s26 = spop %115 }
 0x198   :  { %v97_v32 = vstv %s116_s26 }
 0x199   :  { %98 = vst [vmem:[#allocation8] sm:$0xff] %v97_v32 }
 0x19a   :  { %196 = shalt.err (!%p193_p5)
}
 0x19b   :  { %108 = dma.vmem_to_hbm [thread:$0]  %s106_s2, 128, %s250_s3, [#allocation4]  }
 0x19c   :  { %209 = dma.done.wait [#allocation4], 128  }
 0x19d   :  { %210 = vsyncadd [#allocation4], 4294967168 }
 0x19e   :  { %112 = vsyncpa [#allocation3], 1 }
 0x19f   :  { %113 = vsyncpa [#allocation6], 1 }
 0x1a0   :  { %114 = vsyncpa [#allocation4], 1 }

</bundles_post_ra>
